<compile_context>
chip_gen: v7x
topology: tpu7x:2x2x1
jax: 0.10.0
libtpu: 0.0.40
codegen_flags: <defaults>
</compile_context>

<pallas_src>
import functools

import jax
import jax.numpy as jnp
from jax import lax
from jax.experimental import pallas as pl
from jax.experimental.pallas import tpu as pltpu


def _round_up(x, m):
    return ((x + m - 1) // m) * m


def _island_loss_kernel(scal_ref, label_ref, feat_ref, centers_ref,
                        out_ref, acc_ref, *, tile_b, num_classes, true_batch):
    # scal_ref (SMEM f32[2]) = [lamda, 1/batch_size_divisor]
    i = pl.program_id(0)

    @pl.when(i == 0)
    def _init():
        acc_ref[0] = 0.0

    feat = feat_ref[...].astype(jnp.float32)      # (tile_b, D), upcast if bf16
    c = centers_ref[...].astype(jnp.float32)      # (N, D), VMEM-resident
    lbl = label_ref[...]                          # (tile_b, 1) int32

    # ---- in-kernel gather: cb = centers[label] (exact, static loop over N) ----
    cb = jnp.zeros_like(feat)
    for j in range(num_classes):                  # N is small & static
        cb = jnp.where(lbl == j, c[j:j + 1, :], cb)

    diff = feat - cb
    if true_batch % tile_b != 0:                  # mask the partial last tile
        row = i * tile_b + lax.broadcasted_iota(jnp.int32, (tile_b, 1), 0)
        diff = jnp.where(row < true_batch, diff, 0.0)

    # center-loss partial sum, accumulated across grid steps.
    acc_ref[0] += jnp.sum(diff * diff)

    # ---- finalize: island term computed exactly once ----
    @pl.when(i == pl.num_programs(0) - 1)
    def _finalize():
        lamda = scal_ref[0]
        inv_div = scal_ref[1]
        center_loss = acc_ref[0] * 0.5 * inv_div

        # sum_{j != k} (cosine_similarity(c_j, c_k) + 1)
        gram = lax.dot_general(c, c, (((1,), (1,)), ((), ())),
                               preferred_element_type=jnp.float32)   # (N, N)
        s = jnp.sum(c * c, axis=1, keepdims=True)                    # (N, 1)
        norms = jnp.sqrt(s)
        denom = jnp.maximum(norms * norms.T, 1e-8)   # torch clamps the product
        cos = gram / denom
        # trace-subtraction instead of an (N,N) iota mask; same eps clamp on
        # the diagonal so zero-norm rows cancel exactly.
        diag_cos = s / jnp.maximum(s, 1e-8)
        n = float(num_classes)
        island = jnp.sum(cos) - jnp.sum(diag_cos) + (n * n - n)

        out_ref[0] = center_loss + lamda * island


def island_loss(label, feat, centers, lamda=0.5, size_average=True, tile_b=None):
    """Mirrors IsLandLoss.forward: returns a shape-(1,) float32 loss."""
    batch = feat.shape[0]
    feat = feat.reshape(batch, -1)
    num_classes, feat_dim = centers.shape
    if feat.shape[1] != feat_dim:
        raise ValueError(
            "Center's dim: {0} should be equal to input feature's dim: {1}".format(
                feat_dim, feat.shape[1]))

    # Stream feat in f32 or bf16 (upcast happens in-kernel); centers stay f32.
    if feat.dtype not in (jnp.float32, jnp.bfloat16):
        feat = feat.astype(jnp.float32)
    centers = centers.astype(jnp.float32)
    label2d = label.astype(jnp.int32).reshape(batch, 1)

    # Batch-tile sizing: sublane multiple per dtype, ~2 MiB per feat tile so
    # 2x double-buffering fits comfortably in every generation's scoped VMEM.
    sub = 8 if feat.dtype == jnp.float32 else 16
    if tile_b is None:
        bytes_per_row = feat.dtype.itemsize * feat_dim
        max_rows = max(sub, ((2 << 20) // bytes_per_row) // sub * sub)
        tile_b = min(max_rows, _round_up(batch, sub), 1024)
    tile_b = max(sub, _round_up(tile_b, sub))
    grid = (pl.cdiv(batch, tile_b),)

    divisor = float(batch) if size_average else 1.0
    scalars = jnp.array([lamda, 1.0 / divisor], dtype=jnp.float32)

    kernel = functools.partial(_island_loss_kernel, tile_b=tile_b,
                               num_classes=num_classes, true_batch=batch)

    out = pl.pallas_call(
        kernel,
        out_shape=jax.ShapeDtypeStruct((1,), jnp.float32),
        grid_spec=pltpu.PrefetchScalarGridSpec(
            num_scalar_prefetch=0,
            grid=grid,
            in_specs=[
                pl.BlockSpec(memory_space=pltpu.MemorySpace.SMEM),       # scalars
                pl.BlockSpec((tile_b, 1), lambda i: (i, 0)),             # labels
                pl.BlockSpec((tile_b, feat_dim), lambda i: (i, 0)),      # feat tiles
                pl.BlockSpec((num_classes, feat_dim), lambda i: (0, 0)),  # centers (resident)
            ],
            out_specs=pl.BlockSpec(memory_space=pltpu.MemorySpace.SMEM),
            scratch_shapes=[pltpu.SMEM((1,), jnp.float32)],              # loss accumulator
        ),
        compiler_params=pltpu.CompilerParams(
            dimension_semantics=("arbitrary",)),   # grid axis is a reduction
    )(scalars, label2d, feat, centers)
    return out  # shape (1,), same as the PyTorch module's output


def _ref_loss(label, feat, centers, lamda, size_average=True):
    """Pure-JAX reference of IslandlossFunc.forward."""
    B = feat.shape[0]
    feat = feat.reshape(B, -1).astype(jnp.float32)
    cb = centers[label]
    bsz = B if size_average else 1
    center_loss = jnp.sum((feat - cb) ** 2) / 2.0 / bsz
    nrm = jnp.linalg.norm(centers, axis=1)
    gram = jnp.einsum("nd,md->nm", centers, centers,
                      precision=lax.Precision.HIGHEST)
    cos = gram / jnp.maximum(jnp.outer(nrm, nrm), 1e-8)
    n = centers.shape[0]
    mask = ~jnp.eye(n, dtype=bool)
    island = jnp.sum(jnp.where(mask, cos + 1.0, 0.0))
    return center_loss + lamda * island


if __name__ == "__main__":
    key = jax.random.PRNGKey(0)
    k_centers, k_feat, k_label = jax.random.split(key, 3)

    num_classes, feat_dim, batch = 4, 32, 8
    lamda = 0.5

    # Deterministic parameter init (torch.randn(num_classes, feat_dim) analogue).
    centers = jax.random.normal(k_centers, (num_classes, feat_dim), dtype=jnp.float32)
    feat = jax.random.normal(k_feat, (batch, feat_dim), dtype=jnp.float32)
    label = jax.random.randint(k_label, (batch,), 0, num_classes, dtype=jnp.int32)

    loss = island_loss(label, feat, centers, lamda=lamda)
    jax.block_until_ready(loss)

    ref = _ref_loss(label, feat, centers, lamda)
    assert loss.shape == (1,)
    assert jnp.allclose(loss[0], ref, rtol=1e-4, atol=1e-4), (loss, ref)

    print("KERNEL_OK")
</pallas_src>

<mosaic_0001>
module attributes {stable_mosaic.version = 11 : i64} {
  func.func @_island_loss_kernel(%arg0: i32, %arg1: memref<2xf32, #tpu.memory_space<smem>>, %arg2: memref<8x1xi32, #tpu.memory_space<vmem>>, %arg3: memref<8x32xf32, #tpu.memory_space<vmem>>, %arg4: memref<4x32xf32, #tpu.memory_space<vmem>>, %arg5: memref<1xf32, #tpu.memory_space<smem>>, %arg6: memref<1xf32, #tpu.memory_space<smem>>) attributes {dimension_semantics = [#tpu.dimension_semantics<arbitrary>], iteration_bounds = array<i64: 1>, scalar_prefetch = 0 : i64, scratch_operands = 1 : i64, tpu.core_type = #tpu.core_type<tc>, window_params = [{transform_indices = @transform_0, window_bounds = array<i64: 2>}, {transform_indices = @transform_1, window_bounds = array<i64: 8, 1>}, {transform_indices = @transform_2, window_bounds = array<i64: 8, 32>}, {pipeline_mode = #tpu.pipeline_mode<synchronous>, transform_indices = @transform_3, window_bounds = array<i64: 4, 32>}, {transform_indices = @transform_4, window_bounds = array<i64: 1>}]} {
    %c0_i32 = arith.constant 0 : i32
    %0 = arith.cmpi eq, %arg0, %c0_i32 : i32
    %1 = arith.extui %0 : i1 to i32
    %c0_i32_0 = arith.constant 0 : i32
    %2 = arith.cmpi ne, %1, %c0_i32_0 : i32
    scf.if %2 {
      %cst_12 = arith.constant 0.000000e+00 : f32
      %c0_13 = arith.constant 0 : index
      %51 = memref.load %arg6[%c0_13] : memref<1xf32, #tpu.memory_space<smem>>
      memref.store %cst_12, %arg6[%c0_13] : memref<1xf32, #tpu.memory_space<smem>>
    } else {
    }
    %c0 = arith.constant 0 : index
    %c0_1 = arith.constant 0 : index
    %3 = vector.load %arg3[%c0, %c0_1] : memref<8x32xf32, #tpu.memory_space<vmem>>, vector<8x32xf32>
    %c0_2 = arith.constant 0 : index
    %c0_3 = arith.constant 0 : index
    %4 = vector.load %arg4[%c0_2, %c0_3] : memref<4x32xf32, #tpu.memory_space<vmem>>, vector<4x32xf32>
    %c0_4 = arith.constant 0 : index
    %c0_5 = arith.constant 0 : index
    %5 = vector.load %arg2[%c0_4, %c0_5] : memref<8x1xi32, #tpu.memory_space<vmem>>, vector<8x1xi32>
    %cst = arith.constant 0.000000e+00 : f32
    %6 = vector.broadcast %cst : f32 to vector<8x32xf32>
    %c0_i32_6 = arith.constant 0 : i32
    %7 = vector.broadcast %c0_i32_6 : i32 to vector<8x1xi32>
    %8 = arith.cmpi eq, %5, %7 : vector<8x1xi32>
    %9 = vector.extract_strided_slice %4 {offsets = [0, 0], sizes = [1, 32], strides = [1, 1]} : vector<4x32xf32> to vector<1x32xf32>
    %10 = vector.shape_cast %8 : vector<8x1xi1> to vector<8x1xi1>
    %11 = vector.broadcast %10 : vector<8x1xi1> to vector<8x32xi1>
    %12 = vector.shape_cast %9 : vector<1x32xf32> to vector<1x32xf32>
    %13 = vector.broadcast %12 : vector<1x32xf32> to vector<8x32xf32>
    %14 = arith.select %11, %13, %6 : vector<8x32xi1>, vector<8x32xf32>
    %c1_i32 = arith.constant 1 : i32
    %15 = vector.broadcast %c1_i32 : i32 to vector<8x1xi32>
    %16 = arith.cmpi eq, %5, %15 : vector<8x1xi32>
    %17 = vector.extract_strided_slice %4 {offsets = [1, 0], sizes = [1, 32], strides = [1, 1]} : vector<4x32xf32> to vector<1x32xf32>
    %18 = vector.shape_cast %16 : vector<8x1xi1> to vector<8x1xi1>
    %19 = vector.broadcast %18 : vector<8x1xi1> to vector<8x32xi1>
    %20 = vector.shape_cast %17 : vector<1x32xf32> to vector<1x32xf32>
    %21 = vector.broadcast %20 : vector<1x32xf32> to vector<8x32xf32>
    %22 = arith.select %19, %21, %14 : vector<8x32xi1>, vector<8x32xf32>
    %c2_i32 = arith.constant 2 : i32
    %23 = vector.broadcast %c2_i32 : i32 to vector<8x1xi32>
    %24 = arith.cmpi eq, %5, %23 : vector<8x1xi32>
    %25 = vector.extract_strided_slice %4 {offsets = [2, 0], sizes = [1, 32], strides = [1, 1]} : vector<4x32xf32> to vector<1x32xf32>
    %26 = vector.shape_cast %24 : vector<8x1xi1> to vector<8x1xi1>
    %27 = vector.broadcast %26 : vector<8x1xi1> to vector<8x32xi1>
    %28 = vector.shape_cast %25 : vector<1x32xf32> to vector<1x32xf32>
    %29 = vector.broadcast %28 : vector<1x32xf32> to vector<8x32xf32>
    %30 = arith.select %27, %29, %22 : vector<8x32xi1>, vector<8x32xf32>
    %c3_i32 = arith.constant 3 : i32
    %31 = vector.broadcast %c3_i32 : i32 to vector<8x1xi32>
    %32 = arith.cmpi eq, %5, %31 : vector<8x1xi32>
    %33 = vector.extract_strided_slice %4 {offsets = [3, 0], sizes = [1, 32], strides = [1, 1]} : vector<4x32xf32> to vector<1x32xf32>
    %34 = vector.shape_cast %32 : vector<8x1xi1> to vector<8x1xi1>
    %35 = vector.broadcast %34 : vector<8x1xi1> to vector<8x32xi1>
    %36 = vector.shape_cast %33 : vector<1x32xf32> to vector<1x32xf32>
    %37 = vector.broadcast %36 : vector<1x32xf32> to vector<8x32xf32>
    %38 = arith.select %35, %37, %30 : vector<8x32xi1>, vector<8x32xf32>
    %39 = arith.subf %3, %38 : vector<8x32xf32>
    %c0_7 = arith.constant 0 : index
    %40 = memref.load %arg6[%c0_7] : memref<1xf32, #tpu.memory_space<smem>>
    %41 = arith.mulf %39, %39 : vector<8x32xf32>
    %42 = vector.shape_cast %41 : vector<8x32xf32> to vector<1x8x32xf32>
    %cst_8 = arith.constant dense<0.000000e+00> : vector<1xf32>
    %43 = vector.multi_reduction <add>, %42, %cst_8 [1, 2] : vector<1x8x32xf32> to vector<1xf32>
    %44 = vector.shape_cast %43 : vector<1xf32> to vector<1x1x1xf32>
    %45 = vector.extract %44[0, 0, 0] : f32 from vector<1x1x1xf32>
    %46 = arith.addf %40, %45 : f32
    %c0_9 = arith.constant 0 : index
    %47 = memref.load %arg6[%c0_9] : memref<1xf32, #tpu.memory_space<smem>>
    memref.store %46, %arg6[%c0_9] : memref<1xf32, #tpu.memory_space<smem>>
    %c0_i32_10 = arith.constant 0 : i32
    %48 = arith.cmpi eq, %arg0, %c0_i32_10 : i32
    %49 = arith.extui %48 : i1 to i32
    %c0_i32_11 = arith.constant 0 : i32
    %50 = arith.cmpi ne, %49, %c0_i32_11 : i32
    scf.if %50 {
      %c0_12 = arith.constant 0 : index
      %51 = memref.load %arg1[%c0_12] : memref<2xf32, #tpu.memory_space<smem>>
      %c1 = arith.constant 1 : index
      %52 = memref.load %arg1[%c1] : memref<2xf32, #tpu.memory_space<smem>>
      %c0_13 = arith.constant 0 : index
      %53 = memref.load %arg6[%c0_13] : memref<1xf32, #tpu.memory_space<smem>>
      %cst_14 = arith.constant 5.000000e-01 : f32
      %54 = arith.mulf %53, %cst_14 : f32
      %55 = arith.mulf %54, %52 : f32
      %cst_15 = arith.constant dense<0.000000e+00> : vector<4x4xf32>
      %56 = tpu.matmul %4, %4, %cst_15 {dimension_numbers = #tpu.dot_dimension_numbers<[1], [1], [0], [0], [0, 0, 1, 0], [], []>} : vector<4x32xf32>, vector<4x32xf32>, vector<4x4xf32> -> vector<4x4xf32>
      %57 = arith.mulf %4, %4 : vector<4x32xf32>
      %cst_16 = arith.constant dense<0.000000e+00> : vector<4xf32>
      %58 = vector.multi_reduction <add>, %57, %cst_16 [1] : vector<4x32xf32> to vector<4xf32>
      %59 = vector.shape_cast %58 : vector<4xf32> to vector<4x1xf32>
      %60 = math.sqrt %59 : vector<4x1xf32>
      %61 = tpu.transpose %60, [1, 0] : vector<4x1xf32> -> vector<1x4xf32>
      %62 = vector.broadcast %60 : vector<4x1xf32> to vector<4x4xf32>
      %63 = vector.broadcast %61 : vector<1x4xf32> to vector<4x4xf32>
      %64 = arith.mulf %62, %63 : vector<4x4xf32>
      %cst_17 = arith.constant 9.99999993E-9 : f32
      %65 = vector.broadcast %cst_17 : f32 to vector<4x4xf32>
      %66 = arith.maximumf %64, %65 : vector<4x4xf32>
      %67 = arith.divf %56, %66 : vector<4x4xf32>
      %cst_18 = arith.constant 9.99999993E-9 : f32
      %68 = vector.broadcast %cst_18 : f32 to vector<4x1xf32>
      %69 = arith.maximumf %59, %68 : vector<4x1xf32>
      %70 = arith.divf %59, %69 : vector<4x1xf32>
      %71 = vector.shape_cast %67 : vector<4x4xf32> to vector<1x4x4xf32>
      %cst_19 = arith.constant dense<0.000000e+00> : vector<1xf32>
      %72 = vector.multi_reduction <add>, %71, %cst_19 [1, 2] : vector<1x4x4xf32> to vector<1xf32>
      %73 = vector.shape_cast %72 : vector<1xf32> to vector<1x1x1xf32>
      %74 = vector.extract %73[0, 0, 0] : f32 from vector<1x1x1xf32>
      %75 = vector.shape_cast %70 : vector<4x1xf32> to vector<1x4x1xf32>
      %cst_20 = arith.constant dense<0.000000e+00> : vector<1xf32>
      %76 = vector.multi_reduction <add>, %75, %cst_20 [1, 2] : vector<1x4x1xf32> to vector<1xf32>
      %77 = vector.shape_cast %76 : vector<1xf32> to vector<1x1x1xf32>
      %78 = vector.extract %77[0, 0, 0] : f32 from vector<1x1x1xf32>
      %79 = arith.subf %74, %78 : f32
      %cst_21 = arith.constant 1.200000e+01 : f32
      %80 = arith.addf %79, %cst_21 : f32
      %81 = arith.mulf %51, %80 : f32
      %82 = arith.addf %55, %81 : f32
      %c0_22 = arith.constant 0 : index
      %83 = memref.load %arg5[%c0_22] : memref<1xf32, #tpu.memory_space<smem>>
      memref.store %82, %arg5[%c0_22] : memref<1xf32, #tpu.memory_space<smem>>
    } else {
    }
    return
  }
  func.func @transform_0(%arg0: i32) -> i32 {
    %c0_i32 = arith.constant 0 : i32
    %c0_i32_0 = arith.constant 0 : i32
    return %c0_i32 : i32
  }
  func.func @transform_1(%arg0: i32) -> (i32, i32) {
    %c0_i32 = arith.constant 0 : i32
    %c0_i32_0 = arith.constant 0 : i32
    return %arg0, %c0_i32 : i32, i32
  }
  func.func @transform_2(%arg0: i32) -> (i32, i32) {
    %c0_i32 = arith.constant 0 : i32
    %c0_i32_0 = arith.constant 0 : i32
    return %arg0, %c0_i32 : i32, i32
  }
  func.func @transform_3(%arg0: i32) -> (i32, i32) {
    %c0_i32 = arith.constant 0 : i32
    %c0_i32_0 = arith.constant 0 : i32
    %c0_i32_1 = arith.constant 0 : i32
    return %c0_i32, %c0_i32_0 : i32, i32
  }
  func.func @transform_4(%arg0: i32) -> i32 {
    %c0_i32 = arith.constant 0 : i32
    %c0_i32_0 = arith.constant 0 : i32
    return %c0_i32 : i32
  }
}

</mosaic_0001>

<bundles_post_ra>
// kernel: tpu_custom_call.1
= control target key start
LH: loop header
LB: loop body
LE: loop exit
PB: predicated region body
PF: predicated region fallthrough
CT: control target
= control target key end

     0   :  { %9 = vsyncpa [#allocation5], 0  ;;  %s391_s0 = inlined_call_operand.vmem [shape: f32[2], index: 0, kind: input, shape index: {}]   ;;  %s392_s1 = inlined_call_operand.vmem [shape: s32[8,1], index: 1, kind: input, shape index: {}]   ;;  %s393_s2 = inlined_call_operand.vmem [shape: f32[8,32], index: 2, kind: input, shape index: {}]   ;;  %s394_s3 = inlined_call_operand.vmem [shape: f32[4,32], index: 3, kind: input, shape index: {}]   ;;  %s395_s4 = inlined_call_operand.hbm [shape: f32[1], index: 4, kind: output, shape index: {}]  }
   0x1   :  { %10 = vsyncpa [#allocation4], 0  ;;  %s17_s17 = sshll.u32 %s391_s0, 4  ;;  %s18_s17 = int_to_ptr.vmem [resolvable:$true] %s17_s17 }
   0x2   :  { %s308_s18 = scalar_lea.vmem %s18_s17, 16  ;;  %p313_p1 = scmp.lt.s32.totalorder %s18_s17, %s18_s17 }
   0x3   :  { %p309_p0 = scmp.ne.s32.totalorder %s18_s17, %s308_s18  ;;  %p314_p2 = scmp.lt.s32.totalorder %s308_s18, %s308_s18 }
   0x5   :  { %p315_p3 = por %p314_p2, %p313_p1 }
   0x7   :  { %p316_p4 = pnand %p315_p3, %p309_p0 }
   0x9   :  { %319 = shalt.err (!%p316_p4)
}
   0xa   :  { %s334_s19 = smov [#allocation3]  }
   0xb   :  { %20 = dma.vmem_to_smem %s18_s17, 16, %s334_s19, [#allocation5]  }
   0xc   :  { %330 = dma.done.wait [#allocation5], 16  }
   0xd   :  { %331 = vsyncadd [#allocation5], 4294967280 }
   0xe   :  { %30 = sfence }
   0xf   :  { %v38_v0 = vld [vmem:[%s394_s3] sm:$0xf]  ;;  %vm183_vm0 = vcmask 257024   ;;  %v335_v3 = vmov 0   ;;  %v336_v5 = vmov 0.0   ;;  %vm87_vm3 = vcmask 261120  }
  0x10   :  { %v39_v1 = vld [vmem:[%s392_s1] sm:$0xff]  ;;  %v182_v2 = vmul.f32 %v38_v0, %v38_v0  ;;  %301 = vset.pattern.permute.xlu1 %v335_v3  ;;  %300 = vset.pattern.permute.xlu0 %v335_v3  ;;  %vm337_vm5 = vmmov 0   ;;  %v46_v10 = vlaneseq  ;;  %vm248_vm13 = vcmask 3072   ;;  %s104_s24 = sld [smem:[#allocation3]]  ;;  %s320_s9 = scalar_lea.hbm %s395_s4, 16 }
  0x11   :  { %vm51_vm1 = vcmp.eq.s32.totalorder %v39_v1, 1  ;;  %vm62_vm2 = vcmp.eq.s32.totalorder %v39_v1, 2  ;;  %284 = vmatprep.subr.mxu0 %v336_v5  ;;  %vm73_vm4 = vcmp.eq.s32.totalorder %v39_v1, 3  ;;  %286 = vmatprep.mubr.msk.f32.mxu0 %vm337_vm5, %v336_v5  ;;  %vm40_vm6 = vcmp.eq.s32.totalorder %v39_v1, 0  ;;  %v37_v29 = vld [vmem:[%s393_s2] sm:$0xff]  ;;  %s279_s2 = sld [smem:[#allocation3 + $0x1]]  ;;  %p321_p5 = scmp.ne.s32.totalorder %s395_s4, %s320_s9 }
  0x12   :  { %v52_v4 = vsel %vm51_vm1, 1, %v335_v3  ;;  %v184_v6 = vsel %vm183_vm0, %v182_v2, 0.0  ;;  %v63_v7 = vsel %vm62_vm2, 1, %v335_v3  ;;  %285 = vmatpush3.xpose.msk.msra.mxu0 %vm87_vm3, %v38_v0  ;;  %v74_v8 = vsel %vm73_vm4, 1, %v335_v3  ;;  %p324_p6 = scmp.lt.u32.totalorder %s320_s9, %s395_s4 }
  0x13   :  { %54 = vperm.xlu1 %301, %v52_v4   ;;  %185 = vadd.xlane.f32.xlu0 %v184_v6  ;;  %v41_v9 = vsel %vm40_vm6, 1, %v335_v3  ;;  %v47_v12 = vshrl.u32 %v46_v10, 7  ;;  %vm237_vm14 = vcmask 27648  }
  0x14   :  { %p326_p7 = pnand %p324_p6, %p321_p5 }
  0x15   :  { %287 = vmatmul.mubr.msk.f32.vlgmr.msra.gmra.mrb[0].mxu0 %vm87_vm3, %v38_v0  ;;  %v48_v15 = vsub.s32 0, %v47_v12  ;;  %v59_v17 = vsub.s32 1, %v47_v12  ;;  %v70_v18 = vsub.s32 2, %v47_v12  ;;  %v81_v19 = vsub.s32 3, %v47_v12 }
  0x17   :  { %65 = vperm.xlu1 %301, %v63_v7   ;;  %v49_v20 = vrot.slane %v38_v0, %v48_v15  ;;  %v60_v21 = vrot.slane %v38_v0, %v59_v17  ;;  %v71_v24 = vrot.slane %v38_v0, %v70_v18  ;;  %v82_v25 = vrot.slane %v38_v0, %v81_v19 }
  0x1b   :  { %76 = vperm.xlu1 %301, %v74_v8  }
  0x29   :  { %43 = vperm.xlu0 %300, %v41_v9  }
  0x92   :  { %v55_v11 = vpop.permute.xlu1 %54 }
  0x93   :  { %vm56_vm7 = vcmp.eq.s32.totalorder %v55_v11, 1 }
  0x96   :  { %v66_v14 = vpop.permute.xlu1 %65 }
  0x97   :  { %vm67_vm8 = vcmp.eq.s32.totalorder %v66_v14, 1 }
  0x9a   :  { %v77_v22 = vpop.permute.xlu1 %76 }
  0x9b   :  { %vm78_vm10 = vcmp.eq.s32.totalorder %v77_v22, 1 }
  0xa0   :  { %v186_v13 = vpop.xlane.xlu0 %185 }
  0xa1   :  { %302 = vrsqrt.f32 %v186_v13  ;;  %v234_v16 = vmax.f32 %v186_v13, 1e-08  ;;  %vm189_vm11 = vcmp.eq.f32.partialorder %v186_v13, inf  ;;  %v192_v33 = vand.u32 2147483648, %v186_v13 }
  0xa2   :  { %vm191_vm12 = vcmp.eq.f32.partialorder %v186_v13, 0.0 }
  0xa3   :  { %304 = vrcp.f32 %v234_v16 }
  0xa8   :  { %v44_v23 = vpop.permute.xlu0 %43 }
  0xa9   :  { %vm45_vm9 = vcmp.eq.s32.totalorder %v44_v23, 1 }
  0xaa   :  { %v50_v26 = vsel %vm45_vm9, %v49_v20, 0.0 }
  0xab   :  { %v303_v27 = vpop.eup %302  ;;  %v61_v28 = vsel %vm56_vm7, %v60_v21, %v50_v26 }
  0xac   :  { %v72_v30 = vsel %vm67_vm8, %v71_v24, %v61_v28  ;;  %v188_v31 = vmul.f32 %v303_v27, %v186_v13 }
  0xad   :  { %v83_v32 = vsel %vm78_vm10, %v82_v25, %v72_v30  ;;  %v305_v36 = vpop.eup %304 }
  0xae   :  { %v190_v34 = vsel %vm189_vm11, %v186_v13, %v188_v31  ;;  %v84_v35 = vsub.f32 %v37_v29, %v83_v32  ;;  %v236_v40 = vmul.f32 %v305_v36, %v186_v13 }
  0xaf   :  { %v193_v37 = vsel %vm191_vm12, %v192_v33, %v190_v34 }
  0xb0   :  { %194 = vxpose.xlu1.b32.start.end [1/1] (short) (narrow) %v193_v37, 8  ;;  %v86_v38 = vmul.f32 %v84_v35, %v84_v35  ;;  %v249_v41 = vsel %vm248_vm13, %v236_v40, 0.0 }
  0xb2   :  { %v88_v39 = vsel %vm87_vm3, %v86_v38, 0.0 }
  0xb3   :  { %89 = vadd.xlane.f32.xlu0 %v88_v39 }
  0xb7   :  { %250 = vadd.xlane.f32.xlu0 %v249_v41 }
  0xe8   :  { %v178_v42 = vpop.f32.mrb[0].mxu0 }
  0xe9   :  { %v288_v43 = vpop.f32.mrb[1].mxu0 }
 0x130   :  { %v210_v44 = vpop.trf.xlu1 }
 0x131   :  { %v229_v45 = vrot.slane %v210_v44, %v48_v15 }
 0x133   :  { %v230_v46 = vmul.f32 %v229_v45, %v193_v37 }
 0x135   :  { %v231_v47 = vmax.f32 %v230_v46, 1e-08 }
 0x137   :  { %306 = vrcp.f32 %v231_v47 }
 0x140   :  { %v90_v48 = vpop.xlane.xlu0 %89 }
 0x141   :  { %v307_v49 = vpop.eup %306  ;;  %v91_v50 = vrot.slane %v90_v48, 4 }
 0x142   :  { %v233_v51 = vmul.f32 %v307_v49, %v178_v42 }
 0x143   :  { %v92_v52 = vadd.f32 %v91_v50, %v90_v48 }
 0x144   :  { %v238_v53 = vsel %vm237_vm14, %v233_v51, 0.0  ;;  %v251_v58 = vpop.xlane.xlu0 %250 }
 0x145   :  { %v93_v54 = vrot.slane %v92_v52, 2  ;;  %239 = vadd.xlane.f32.xlu1 %v238_v53  ;;  %v252_v59 = vrot.slane %v251_v58, 4 }
 0x147   :  { %v94_v55 = vadd.f32 %v93_v54, %v92_v52  ;;  %v253_v60 = vadd.f32 %v252_v59, %v251_v58 }
 0x149   :  { %v95_v56 = vrot.slane %v94_v55, 1  ;;  %v254_v61 = vrot.slane %v253_v60, 2 }
 0x14b   :  { %v96_v57 = vadd.f32 %v95_v56, %v94_v55  ;;  %v255_v1 = vadd.f32 %v254_v61, %v253_v60 }
 0x14d   :  { %289 = vpush %v96_v57  ;;  %v256_v4 = vrot.slane %v255_v1, 1 }
 0x14f   :  { %v257_v7 = vadd.f32 %v256_v4, %v255_v1 }
 0x17e   :  { %s290_s23 = spop %289 }
 0x17f   :  { %s107_s26 = smul.f32 0.5, %s290_s23 }
 0x181   :  { %s108_s30 = smul.f32 %s279_s2, %s107_s26 }
 0x1d2   :  { %v240_v62 = vpop.xlane.xlu1 %239 }
 0x1d3   :  { %v241_v63 = vrot.slane %v240_v62, 4 }
 0x1d5   :  { %v242_v0 = vadd.f32 %v241_v63, %v240_v62 }
 0x1d7   :  { %v243_v2 = vrot.slane %v242_v0, 2 }
 0x1d9   :  { %v244_v3 = vadd.f32 %v243_v2, %v242_v0 }
 0x1db   :  { %v245_v5 = vrot.slane %v244_v3, 1 }
 0x1dd   :  { %v246_v6 = vadd.f32 %v245_v5, %v244_v3 }
 0x1df   :  { %291 = vpush %v246_v6 }
 0x1e0   :  { %293 = vpush %v257_v7 }
 0x210   :  { %s292_s25 = spop %291 }
 0x211   :  { %s294_s27 = spop %293 }
 0x212   :  { %s259_s28 = ssub.f32 %s292_s25, %s294_s27 }
 0x214   :  { %s260_s29 = sadd.f32 12.0, %s259_s28 }
 0x216   :  { %s261_s5 = smul.f32 %s260_s29, %s104_s24 }
 0x218   :  { %s262_s6 = sadd.f32 %s261_s5, %s108_s30 }
 0x21a   :  { %264 = sst [smem:[#allocation6]] %s262_s6 }
 0x21b   :  { %329 = shalt.err (!%p326_p7)
}
 0x21c   :  { %s338_s14 = smov [#allocation6]  }
 0x21d   :  { %272 = dma.smem_to_hbm %s338_s14, 16, %s395_s4, [#allocation4]  }
 0x21e   :  { %332 = dma.done.wait [#allocation4], 16  }
 0x21f   :  { %333 = vsyncadd [#allocation4], 4294967280 }
 0x220   :  { %276 = sfence }
 0x221   :  { %277 = vsyncpa [#allocation4], 1 }
 0x222   :  { %278 = vsyncpa [#allocation5], 1 }

</bundles_post_ra>
